<compile_context>
chip_gen: v7x
topology: tpu7x:2x2x1
jax: 0.10.0
libtpu: 0.0.40
codegen_flags: <defaults>
</compile_context>

<pallas_src>
import functools

import jax
import jax.numpy as jnp
from jax.experimental import pallas as pl
from jax.experimental.pallas import tpu as pltpu

BN_EPS = 1e-5
LEAKY_SLOPE = 0.2
_LANE = 128
_MAX_BATCH_TILE = 2048


def _round_up(v, m):
    return ((v + m - 1) // m) * m


# ---------------------------------------------------------------------------
# Kernel
# ---------------------------------------------------------------------------
def _disc_kernel(x_ref, w1_ref, b1_ref, w2_ref, b2_ref, w3_ref, b3_ref,
                 out_ref, *, reduce_out):
    cdt = w1_ref.dtype

    # block 1: (BN-folded) Linear -> LeakyReLU.  x arrives f32 / feature-dim
    # unpadded; the cast to the compute dtype is in-kernel VPU work.
    h = jnp.dot(x_ref[...].astype(cdt), w1_ref[...],
                preferred_element_type=jnp.float32)
    h = h + b1_ref[...]
    h = jnp.where(h > 0, h, LEAKY_SLOPE * h)

    # block 2: (BN-folded) Linear -> LeakyReLU
    h = jnp.dot(h.astype(cdt), w2_ref[...], preferred_element_type=jnp.float32)
    h = h + b2_ref[...]
    h = jnp.where(h > 0, h, LEAKY_SLOPE * h)

    # block 3: Linear (use_sigmoid=False)
    o = jnp.dot(h.astype(cdt), w3_ref[...], preferred_element_type=jnp.float32)
    o = o + b3_ref[...]

    if reduce_out:
        # out_dim == 1: padded w3/b3 columns are exactly zero, so the lane sum
        # equals the single real output column.  Lane-dense (1, 1, tb) store;
        # the cross-lane reduce uses the otherwise-idle XLU slot.
        out_ref[...] = (jnp.sum(o, axis=-1)
                        .reshape(out_ref.shape).astype(out_ref.dtype))
    else:
        out_ref[...] = o.astype(out_ref.dtype)


# ---------------------------------------------------------------------------
# Parameter preparation (hoisted out of the per-call path)
# ---------------------------------------------------------------------------
def _fold_bn(w, b, g, be, m, v):
    """Fold BatchNorm1d(running stats) into the preceding Linear. f32 math."""
    s = g * jax.lax.rsqrt(v + BN_EPS)            # (1, out_features)
    return w * s, (b - m) * s + be


def _pad2(a, rows, cols):
    return jnp.pad(a, ((0, rows - a.shape[0]), (0, cols - a.shape[1])))


def prepare_params(params, compute_dtype=jnp.bfloat16):
    """Fold BN, pad feature dims to 128 lanes, cast weights to compute dtype.

    Called once per parameter set; the steady-state forward is then a single
    pallas_call (plus a fused reshape/slice).
    """
    in_dim, hid = params["w1"].shape
    out_dim = params["w3"].shape[1]
    hid_p = _round_up(hid, _LANE)
    out_p = _round_up(out_dim, _LANE)
    cdt = jnp.dtype(compute_dtype)

    w1, b1 = _fold_bn(params["w1"], params["b1"], params["g1"], params["be1"],
                      params["m1"], params["v1"])
    w2, b2 = _fold_bn(params["w2"], params["b2"], params["g2"], params["be2"],
                      params["m2"], params["v2"])
    w3, b3 = params["w3"], params["b3"]

    prepped = dict(
        # x's feature dim stays unpadded, so w1 keeps in_dim rows; every
        # padded row/column below is exactly zero (keeps the out_dim==1
        # lane-sum trick exact).
        w1=_pad2(w1, in_dim, hid_p).astype(cdt),
        b1=_pad2(b1, 1, hid_p),                     # biases stay f32
        w2=_pad2(w2, hid_p, hid_p).astype(cdt),
        b2=_pad2(b2, 1, hid_p),
        w3=_pad2(w3, hid_p, out_p).astype(cdt),
        b3=_pad2(b3, 1, out_p),
    )
    meta = dict(in_dim=in_dim, hid=hid, out_dim=out_dim)
    return prepped, meta


# ---------------------------------------------------------------------------
# Per-generation sizing
# ---------------------------------------------------------------------------
def _vmem_budget():
    """(working-set target, scoped vmem limit) in bytes for this TPU gen."""
    cap = 64 * 1024 * 1024                      # v7x-safe fallback
    try:
        info_cap = int(pltpu.get_tpu_info().vmem_capacity_bytes)
        if info_cap > 0:
            cap = info_cap
    except Exception:
        pass
    budget = (cap * 5) // 8                     # ~40 MiB v7x, ~80 MiB v5e/v6e
    limit = int(min(cap - (4 << 20), (cap * 3) // 4))
    return budget, limit


def _select_batch_tile(B, in_dim, hid_p, out_p, w_itemsize, reduce_out, budget):
    """Largest sublane-aligned batch tile fitting the VMEM budget, while
    keeping >= 4 grid steps for moderate batches (v7x megacore + overlap)."""
    sub = 16 if w_itemsize < 4 else 8
    if B >= 4 * sub:
        tb = _round_up(max(B // 4, sub), sub)
    else:
        tb = _round_up(max(B, sub), sub)
    tb = min(tb, _MAX_BATCH_TILE)

    # Resident weights counted double-buffered (safe if the single-buffer
    # pipeline_mode is unavailable); tile-independent.
    w_bytes = 2 * ((in_dim * hid_p + hid_p * hid_p + hid_p * out_p) * w_itemsize
                   + (2 * hid_p + out_p) * 4)
    while True:
        x_bytes = 2 * tb * in_dim * 4                           # 2x f32 x tiles
        out_bytes = 2 * tb * (4 if reduce_out else out_p * 4)   # 2x out tiles
        # live intermediates: f32 h + compute-dtype recast + next f32 acc
        act_bytes = tb * hid_p * (8 + w_itemsize) + tb * out_p * 4
        if w_bytes + x_bytes + out_bytes + act_bytes <= budget or tb <= sub:
            break
        tb = max(_round_up(tb // 2, sub), sub)
    return tb


# ---------------------------------------------------------------------------
# Forward
# ---------------------------------------------------------------------------
@functools.partial(
    jax.jit,
    static_argnames=("tb", "out_dim", "single_buffer_weights", "vmem_limit"))
def _forward_impl(x, w1, b1, w2, b2, w3, b3, *, tb, out_dim,
                  single_buffer_weights, vmem_limit):
    B, in_dim = x.shape
    out_p = w3.shape[1]
    reduce_out = out_dim == 1

    B_pad = _round_up(B, tb)
    if B_pad != B:
        x = jnp.pad(x, ((0, B_pad - B), (0, 0)))
    num_tiles = B_pad // tb

    if single_buffer_weights:
        def resident(arr):                       # constant block, 1 buffer
            return pl.BlockSpec(arr.shape, lambda i: (0,) * arr.ndim,
                                pipeline_mode=pl.Buffered(1))
    else:
        def resident(arr):
            return pl.BlockSpec(arr.shape, lambda i: (0,) * arr.ndim)

    if reduce_out:
        out_shape = jax.ShapeDtypeStruct((num_tiles, 1, tb), jnp.float32)
        out_spec = pl.BlockSpec((1, 1, tb), lambda i: (i, 0, 0))
    else:
        out_shape = jax.ShapeDtypeStruct((B_pad, out_p), jnp.float32)
        out_spec = pl.BlockSpec((tb, out_p), lambda i: (i, 0))

    out = pl.pallas_call(
        functools.partial(_disc_kernel, reduce_out=reduce_out),
        out_shape=out_shape,
        grid_spec=pltpu.PrefetchScalarGridSpec(
            num_scalar_prefetch=0,
            grid=(num_tiles,),
            in_specs=[
                pl.BlockSpec((tb, in_dim), lambda i: (i, 0)),   # pipelined x
                resident(w1), resident(b1),
                resident(w2), resident(b2),
                resident(w3), resident(b3),
            ],
            out_specs=out_spec,
        ),
        compiler_params=pltpu.CompilerParams(
            dimension_semantics=("parallel",),
            vmem_limit_bytes=vmem_limit,
        ),
    )(x, w1, b1, w2, b2, w3, b3)

    if reduce_out:
        return out.reshape(B_pad, 1)[:B]         # fused with the kernel
    return out[:B, :out_dim]


def discriminator_forward(x, prepped, meta):
    """x: (B, in_dim) float32. prepped/meta from prepare_params()."""
    B, in_dim = x.shape
    hid_p = prepped["w2"].shape[0]
    out_p = prepped["w3"].shape[1]
    out_dim = meta["out_dim"]
    w_itemsize = jnp.dtype(prepped["w1"].dtype).itemsize

    budget, vmem_limit = _vmem_budget()
    tb = _select_batch_tile(B, in_dim, hid_p, out_p, w_itemsize,
                            out_dim == 1, budget)

    args = (x, prepped["w1"], prepped["b1"], prepped["w2"], prepped["b2"],
            prepped["w3"], prepped["b3"])
    kw = dict(tb=tb, out_dim=out_dim, vmem_limit=vmem_limit)
    try:
        return _forward_impl(*args, single_buffer_weights=True, **kw)
    except Exception:
        # Pallas build without BlockSpec(pipeline_mode=pl.Buffered(1)):
        # fall back to default double-buffered resident weights (tiny cost).
        return _forward_impl(*args, single_buffer_weights=False, **kw)


# ---------------------------------------------------------------------------
# Synthetic params + pure-JAX reference
# ---------------------------------------------------------------------------
def init_params(key, in_dim, out_dim):
    """Deterministic synthetic parameter init matching the module's shapes."""
    hid = in_dim // 2
    ks = jax.random.split(key, 6)

    def linear(kw, kb, fan_in, fan_out):
        bound = 1.0 / jnp.sqrt(fan_in)
        w = jax.random.uniform(kw, (fan_in, fan_out), jnp.float32, -bound, bound)
        b = jax.random.uniform(kb, (1, fan_out), jnp.float32, -bound, bound)
        return w, b

    w1, b1 = linear(ks[0], ks[1], in_dim, hid)
    w2, b2 = linear(ks[2], ks[3], hid, hid)
    w3, b3 = linear(ks[4], ks[5], hid, out_dim)

    # BatchNorm1d defaults: gamma=1, beta=0, running_mean=0, running_var=1
    def bn(dim):
        return (jnp.ones((1, dim), jnp.float32), jnp.zeros((1, dim), jnp.float32),
                jnp.zeros((1, dim), jnp.float32), jnp.ones((1, dim), jnp.float32))

    g1, be1, m1, v1 = bn(hid)
    g2, be2, m2, v2 = bn(hid)

    return dict(w1=w1, b1=b1, g1=g1, be1=be1, m1=m1, v1=v1,
                w2=w2, b2=b2, g2=g2, be2=be2, m2=m2, v2=v2,
                w3=w3, b3=b3)


def reference_forward(x, p):
    """Pure-JAX reference (unfolded BN) for correctness checking."""
    h = x @ p["w1"] + p["b1"]
    h = (h - p["m1"]) * (p["g1"] / jnp.sqrt(p["v1"] + BN_EPS)) + p["be1"]
    h = jnp.where(h > 0, h, LEAKY_SLOPE * h)
    h = h @ p["w2"] + p["b2"]
    h = (h - p["m2"]) * (p["g2"] / jnp.sqrt(p["v2"] + BN_EPS)) + p["be2"]
    h = jnp.where(h > 0, h, LEAKY_SLOPE * h)
    return h @ p["w3"] + p["b3"]


if __name__ == "__main__":
    key = jax.random.PRNGKey(0)
    k_x, k_p = jax.random.split(key)

    # small shapes consistent with the module (in_dim even so hid = in_dim/2)
    batch, in_dim, out_dim = 8, 32, 1
    x = jax.random.normal(k_x, (batch, in_dim), dtype=jnp.float32)
    params = init_params(k_p, in_dim, out_dim)
    ref = reference_forward(x, params)

    # f32 compute path (BN fold / zero padding are exact; tolerance covers
    # MXU f32-matmul emulation on both sides)
    prep32, meta32 = prepare_params(params, compute_dtype=jnp.float32)
    out_f32 = jax.block_until_ready(discriminator_forward(x, prep32, meta32))
    assert out_f32.shape == (batch, out_dim)
    assert jnp.allclose(out_f32, ref, atol=1e-2, rtol=1e-2)

    # performance path (bf16 matmuls, f32 accumulation)
    prep16, meta16 = prepare_params(params, compute_dtype=jnp.bfloat16)
    out_bf16 = jax.block_until_ready(discriminator_forward(x, prep16, meta16))
    assert out_bf16.shape == (batch, out_dim)
    assert jnp.allclose(out_bf16, ref, atol=6e-2, rtol=6e-2)

    print("KERNEL_OK")
</pallas_src>

<mosaic_0001>
module attributes {stable_mosaic.version = 11 : i64} {
  func.func @_disc_kernel(%arg0: i32, %arg1: memref<8x32xf32, #tpu.memory_space<vmem>>, %arg2: memref<32x128xf32, #tpu.memory_space<vmem>>, %arg3: memref<1x128xf32, #tpu.memory_space<vmem>>, %arg4: memref<128x128xf32, #tpu.memory_space<vmem>>, %arg5: memref<1x128xf32, #tpu.memory_space<vmem>>, %arg6: memref<128x128xf32, #tpu.memory_space<vmem>>, %arg7: memref<1x128xf32, #tpu.memory_space<vmem>>, %arg8: memref<1x1x8xf32, #tpu.memory_space<vmem>>) attributes {dimension_semantics = [#tpu.dimension_semantics<parallel>], iteration_bounds = array<i64: 1>, scalar_prefetch = 0 : i64, scratch_operands = 0 : i64, tpu.core_type = #tpu.core_type<tc>, window_params = [{transform_indices = @transform_0, window_bounds = array<i64: 8, 32>}, {pipeline_mode = #tpu.pipeline_mode<synchronous>, transform_indices = @transform_1, window_bounds = array<i64: 32, 128>}, {pipeline_mode = #tpu.pipeline_mode<synchronous>, transform_indices = @transform_2, window_bounds = array<i64: 1, 128>}, {pipeline_mode = #tpu.pipeline_mode<synchronous>, transform_indices = @transform_3, window_bounds = array<i64: 128, 128>}, {pipeline_mode = #tpu.pipeline_mode<synchronous>, transform_indices = @transform_4, window_bounds = array<i64: 1, 128>}, {pipeline_mode = #tpu.pipeline_mode<synchronous>, transform_indices = @transform_5, window_bounds = array<i64: 128, 128>}, {pipeline_mode = #tpu.pipeline_mode<synchronous>, transform_indices = @transform_6, window_bounds = array<i64: 1, 128>}, {transform_indices = @transform_7, window_bounds = array<i64: 1, 1, 8>}]} {
    %c0 = arith.constant 0 : index
    %c0_0 = arith.constant 0 : index
    %0 = vector.load %arg1[%c0, %c0_0] : memref<8x32xf32, #tpu.memory_space<vmem>>, vector<8x32xf32>
    %c0_1 = arith.constant 0 : index
    %c0_2 = arith.constant 0 : index
    %1 = vector.load %arg2[%c0_1, %c0_2] : memref<32x128xf32, #tpu.memory_space<vmem>>, vector<32x128xf32>
    %cst = arith.constant dense<0.000000e+00> : vector<8x128xf32>
    %2 = tpu.matmul %0, %1, %cst {dimension_numbers = #tpu.dot_dimension_numbers<[1], [0], [0], [1], [0, 0, 1, 1], [], []>} : vector<8x32xf32>, vector<32x128xf32>, vector<8x128xf32> -> vector<8x128xf32>
    %c0_3 = arith.constant 0 : index
    %c0_4 = arith.constant 0 : index
    %3 = vector.load %arg3[%c0_3, %c0_4] : memref<1x128xf32, #tpu.memory_space<vmem>>, vector<1x128xf32>
    %4 = vector.broadcast %3 : vector<1x128xf32> to vector<8x128xf32>
    %5 = arith.addf %2, %4 : vector<8x128xf32>
    %cst_5 = arith.constant 0.000000e+00 : f32
    %6 = vector.broadcast %cst_5 : f32 to vector<8x128xf32>
    %7 = arith.cmpf ogt, %5, %6 : vector<8x128xf32>
    %cst_6 = arith.constant 2.000000e-01 : f32
    %8 = vector.broadcast %cst_6 : f32 to vector<8x128xf32>
    %9 = arith.mulf %8, %5 : vector<8x128xf32>
    %10 = arith.select %7, %5, %9 : vector<8x128xi1>, vector<8x128xf32>
    %c0_7 = arith.constant 0 : index
    %c0_8 = arith.constant 0 : index
    %11 = vector.load %arg4[%c0_7, %c0_8] : memref<128x128xf32, #tpu.memory_space<vmem>>, vector<128x128xf32>
    %cst_9 = arith.constant dense<0.000000e+00> : vector<8x128xf32>
    %12 = tpu.matmul %10, %11, %cst_9 {dimension_numbers = #tpu.dot_dimension_numbers<[1], [0], [0], [1], [0, 0, 1, 1], [], []>} : vector<8x128xf32>, vector<128x128xf32>, vector<8x128xf32> -> vector<8x128xf32>
    %c0_10 = arith.constant 0 : index
    %c0_11 = arith.constant 0 : index
    %13 = vector.load %arg5[%c0_10, %c0_11] : memref<1x128xf32, #tpu.memory_space<vmem>>, vector<1x128xf32>
    %14 = vector.broadcast %13 : vector<1x128xf32> to vector<8x128xf32>
    %15 = arith.addf %12, %14 : vector<8x128xf32>
    %cst_12 = arith.constant 0.000000e+00 : f32
    %16 = vector.broadcast %cst_12 : f32 to vector<8x128xf32>
    %17 = arith.cmpf ogt, %15, %16 : vector<8x128xf32>
    %cst_13 = arith.constant 2.000000e-01 : f32
    %18 = vector.broadcast %cst_13 : f32 to vector<8x128xf32>
    %19 = arith.mulf %18, %15 : vector<8x128xf32>
    %20 = arith.select %17, %15, %19 : vector<8x128xi1>, vector<8x128xf32>
    %c0_14 = arith.constant 0 : index
    %c0_15 = arith.constant 0 : index
    %21 = vector.load %arg6[%c0_14, %c0_15] : memref<128x128xf32, #tpu.memory_space<vmem>>, vector<128x128xf32>
    %cst_16 = arith.constant dense<0.000000e+00> : vector<8x128xf32>
    %22 = tpu.matmul %20, %21, %cst_16 {dimension_numbers = #tpu.dot_dimension_numbers<[1], [0], [0], [1], [0, 0, 1, 1], [], []>} : vector<8x128xf32>, vector<128x128xf32>, vector<8x128xf32> -> vector<8x128xf32>
    %c0_17 = arith.constant 0 : index
    %c0_18 = arith.constant 0 : index
    %23 = vector.load %arg7[%c0_17, %c0_18] : memref<1x128xf32, #tpu.memory_space<vmem>>, vector<1x128xf32>
    %24 = vector.broadcast %23 : vector<1x128xf32> to vector<8x128xf32>
    %25 = arith.addf %22, %24 : vector<8x128xf32>
    %cst_19 = arith.constant dense<0.000000e+00> : vector<8xf32>
    %26 = vector.multi_reduction <add>, %25, %cst_19 [1] : vector<8x128xf32> to vector<8xf32>
    %27 = vector.shape_cast %26 : vector<8xf32> to vector<1x1x8xf32>
    %c0_20 = arith.constant 0 : index
    %c0_21 = arith.constant 0 : index
    %c0_22 = arith.constant 0 : index
    %28 = vector.load %arg8[%c0_20, %c0_21, %c0_22] : memref<1x1x8xf32, #tpu.memory_space<vmem>>, vector<1x1x8xf32>
    tpu.vector_store %arg8[%c0_20, %c0_21, %c0_22], %27 {strides = array<i32>} : memref<1x1x8xf32, #tpu.memory_space<vmem>>, vector<1x1x8xf32>,
    return
  }
  func.func @transform_0(%arg0: i32) -> (i32, i32) {
    %c0_i32 = arith.constant 0 : i32
    %c0_i32_0 = arith.constant 0 : i32
    return %arg0, %c0_i32 : i32, i32
  }
  func.func @transform_1(%arg0: i32) -> (i32, i32) {
    %c0_i32 = arith.constant 0 : i32
    %c0_i32_0 = arith.constant 0 : i32
    %c0_i32_1 = arith.constant 0 : i32
    return %c0_i32, %c0_i32_0 : i32, i32
  }
  func.func @transform_2(%arg0: i32) -> (i32, i32) {
    %c0_i32 = arith.constant 0 : i32
    %c0_i32_0 = arith.constant 0 : i32
    %c0_i32_1 = arith.constant 0 : i32
    return %c0_i32, %c0_i32_0 : i32, i32
  }
  func.func @transform_3(%arg0: i32) -> (i32, i32) {
    %c0_i32 = arith.constant 0 : i32
    %c0_i32_0 = arith.constant 0 : i32
    %c0_i32_1 = arith.constant 0 : i32
    return %c0_i32, %c0_i32_0 : i32, i32
  }
  func.func @transform_4(%arg0: i32) -> (i32, i32) {
    %c0_i32 = arith.constant 0 : i32
    %c0_i32_0 = arith.constant 0 : i32
    %c0_i32_1 = arith.constant 0 : i32
    return %c0_i32, %c0_i32_0 : i32, i32
  }
  func.func @transform_5(%arg0: i32) -> (i32, i32) {
    %c0_i32 = arith.constant 0 : i32
    %c0_i32_0 = arith.constant 0 : i32
    %c0_i32_1 = arith.constant 0 : i32
    return %c0_i32, %c0_i32_0 : i32, i32
  }
  func.func @transform_6(%arg0: i32) -> (i32, i32) {
    %c0_i32 = arith.constant 0 : i32
    %c0_i32_0 = arith.constant 0 : i32
    %c0_i32_1 = arith.constant 0 : i32
    return %c0_i32, %c0_i32_0 : i32, i32
  }
  func.func @transform_7(%arg0: i32) -> (i32, i32, i32) {
    %c0_i32 = arith.constant 0 : i32
    %c0_i32_0 = arith.constant 0 : i32
    %c0_i32_1 = arith.constant 0 : i32
    return %arg0, %c0_i32, %c0_i32_0 : i32, i32, i32
  }
}

module attributes {stable_mosaic.version = 11 : i64} {
  func.func @_disc_kernel(%arg0: i32, %arg1: memref<8x32xf32, #tpu.memory_space<vmem>>, %arg2: memref<32x128xf32, #tpu.memory_space<vmem>>, %arg3: memref<1x128xf32, #tpu.memory_space<vmem>>, %arg4: memref<128x128xf32, #tpu.memory_space<vmem>>, %arg5: memref<1x128xf32, #tpu.memory_space<vmem>>, %arg6: memref<128x128xf32, #tpu.memory_space<vmem>>, %arg7: memref<1x128xf32, #tpu.memory_space<vmem>>, %arg8: memref<1x1x8xf32, #tpu.memory_space<vmem>>) attributes {dimension_semantics = [#tpu.dimension_semantics<parallel>], iteration_bounds = array<i64: 1>, scalar_prefetch = 0 : i64, scratch_operands = 0 : i64, tpu.core_type = #tpu.core_type<tc>, window_params = [{transform_indices = @transform_0, window_bounds = array<i64: 8, 32>}, {pipeline_mode = #tpu.pipeline_mode<synchronous>, transform_indices = @transform_1, window_bounds = array<i64: 32, 128>}, {pipeline_mode = #tpu.pipeline_mode<synchronous>, transform_indices = @transform_2, window_bounds = array<i64: 1, 128>}, {pipeline_mode = #tpu.pipeline_mode<synchronous>, transform_indices = @transform_3, window_bounds = array<i64: 128, 128>}, {pipeline_mode = #tpu.pipeline_mode<synchronous>, transform_indices = @transform_4, window_bounds = array<i64: 1, 128>}, {pipeline_mode = #tpu.pipeline_mode<synchronous>, transform_indices = @transform_5, window_bounds = array<i64: 128, 128>}, {pipeline_mode = #tpu.pipeline_mode<synchronous>, transform_indices = @transform_6, window_bounds = array<i64: 1, 128>}, {transform_indices = @transform_7, window_bounds = array<i64: 1, 1, 8>}]} {
    %c0 = arith.constant 0 : index
    %c0_0 = arith.constant 0 : index
    %0 = vector.load %arg1[%c0, %c0_0] : memref<8x32xf32, #tpu.memory_space<vmem>>, vector<8x32xf32>
    %c0_1 = arith.constant 0 : index
    %c0_2 = arith.constant 0 : index
    %1 = vector.load %arg2[%c0_1, %c0_2] : memref<32x128xf32, #tpu.memory_space<vmem>>, vector<32x128xf32>
    %cst = arith.constant dense<0.000000e+00> : vector<8x128xf32>
    %2 = tpu.matmul %0, %1, %cst {dimension_numbers = #tpu.dot_dimension_numbers<[1], [0], [0], [1], [0, 0, 1, 1], [], []>} : vector<8x32xf32>, vector<32x128xf32>, vector<8x128xf32> -> vector<8x128xf32>
    %c0_3 = arith.constant 0 : index
    %c0_4 = arith.constant 0 : index
    %3 = vector.load %arg3[%c0_3, %c0_4] : memref<1x128xf32, #tpu.memory_space<vmem>>, vector<1x128xf32>
    %4 = vector.broadcast %3 : vector<1x128xf32> to vector<8x128xf32>
    %5 = arith.addf %2, %4 : vector<8x128xf32>
    %cst_5 = arith.constant 0.000000e+00 : f32
    %6 = vector.broadcast %cst_5 : f32 to vector<8x128xf32>
    %7 = arith.cmpf ogt, %5, %6 : vector<8x128xf32>
    %cst_6 = arith.constant 2.000000e-01 : f32
    %8 = vector.broadcast %cst_6 : f32 to vector<8x128xf32>
    %9 = arith.mulf %8, %5 : vector<8x128xf32>
    %10 = arith.select %7, %5, %9 : vector<8x128xi1>, vector<8x128xf32>
    %c0_7 = arith.constant 0 : index
    %c0_8 = arith.constant 0 : index
    %11 = vector.load %arg4[%c0_7, %c0_8] : memref<128x128xf32, #tpu.memory_space<vmem>>, vector<128x128xf32>
    %cst_9 = arith.constant dense<0.000000e+00> : vector<8x128xf32>
    %12 = tpu.matmul %10, %11, %cst_9 {dimension_numbers = #tpu.dot_dimension_numbers<[1], [0], [0], [1], [0, 0, 1, 1], [], []>} : vector<8x128xf32>, vector<128x128xf32>, vector<8x128xf32> -> vector<8x128xf32>
    %c0_10 = arith.constant 0 : index
    %c0_11 = arith.constant 0 : index
    %13 = vector.load %arg5[%c0_10, %c0_11] : memref<1x128xf32, #tpu.memory_space<vmem>>, vector<1x128xf32>
    %14 = vector.broadcast %13 : vector<1x128xf32> to vector<8x128xf32>
    %15 = arith.addf %12, %14 : vector<8x128xf32>
    %cst_12 = arith.constant 0.000000e+00 : f32
    %16 = vector.broadcast %cst_12 : f32 to vector<8x128xf32>
    %17 = arith.cmpf ogt, %15, %16 : vector<8x128xf32>
    %cst_13 = arith.constant 2.000000e-01 : f32
    %18 = vector.broadcast %cst_13 : f32 to vector<8x128xf32>
    %19 = arith.mulf %18, %15 : vector<8x128xf32>
    %20 = arith.select %17, %15, %19 : vector<8x128xi1>, vector<8x128xf32>
    %c0_14 = arith.constant 0 : index
    %c0_15 = arith.constant 0 : index
    %21 = vector.load %arg6[%c0_14, %c0_15] : memref<128x128xf32, #tpu.memory_space<vmem>>, vector<128x128xf32>
    %cst_16 = arith.constant dense<0.000000e+00> : vector<8x128xf32>
    %22 = tpu.matmul %20, %21, %cst_16 {dimension_numbers = #tpu.dot_dimension_numbers<[1], [0], [0], [1], [0, 0, 1, 1], [], []>} : vector<8x128xf32>, vector<128x128xf32>, vector<8x128xf32> -> vector<8x128xf32>
    %c0_17 = arith.constant 0 : index
    %c0_18 = arith.constant 0 : index
    %23 = vector.load %arg7[%c0_17, %c0_18] : memref<1x128xf32, #tpu.memory_space<vmem>>, vector<1x128xf32>
    %24 = vector.broadcast %23 : vector<1x128xf32> to vector<8x128xf32>
    %25 = arith.addf %22, %24 : vector<8x128xf32>
    %cst_19 = arith.constant dense<0.000000e+00> : vector<8xf32>
    %26 = vector.multi_reduction <add>, %25, %cst_19 [1] : vector<8x128xf32> to vector<8xf32>
    %27 = vector.shape_cast %26 : vector<8xf32> to vector<1x1x8xf32>
    %c0_20 = arith.constant 0 : index
    %c0_21 = arith.constant 0 : index
    %c0_22 = arith.constant 0 : index
    %28 = vector.load %arg8[%c0_20, %c0_21, %c0_22] : memref<1x1x8xf32, #tpu.memory_space<vmem>>, vector<1x1x8xf32>
    tpu.vector_store %arg8[%c0_20, %c0_21, %c0_22], %27 {strides = array<i32>} : memref<1x1x8xf32, #tpu.memory_space<vmem>>, vector<1x1x8xf32>,
    return
  }
  func.func @transform_0(%arg0: i32) -> (i32, i32) {
    %c0_i32 = arith.constant 0 : i32
    %c0_i32_0 = arith.constant 0 : i32
    return %arg0, %c0_i32 : i32, i32
  }
  func.func @transform_1(%arg0: i32) -> (i32, i32) {
    %c0_i32 = arith.constant 0 : i32
    %c0_i32_0 = arith.constant 0 : i32
    %c0_i32_1 = arith.constant 0 : i32
    return %c0_i32, %c0_i32_0 : i32, i32
  }
  func.func @transform_2(%arg0: i32) -> (i32, i32) {
    %c0_i32 = arith.constant 0 : i32
    %c0_i32_0 = arith.constant 0 : i32
    %c0_i32_1 = arith.constant 0 : i32
    return %c0_i32, %c0_i32_0 : i32, i32
  }
  func.func @transform_3(%arg0: i32) -> (i32, i32) {
    %c0_i32 = arith.constant 0 : i32
    %c0_i32_0 = arith.constant 0 : i32
    %c0_i32_1 = arith.constant 0 : i32
    return %c0_i32, %c0_i32_0 : i32, i32
  }
  func.func @transform_4(%arg0: i32) -> (i32, i32) {
    %c0_i32 = arith.constant 0 : i32
    %c0_i32_0 = arith.constant 0 : i32
    %c0_i32_1 = arith.constant 0 : i32
    return %c0_i32, %c0_i32_0 : i32, i32
  }
  func.func @transform_5(%arg0: i32) -> (i32, i32) {
    %c0_i32 = arith.constant 0 : i32
    %c0_i32_0 = arith.constant 0 : i32
    %c0_i32_1 = arith.constant 0 : i32
    return %c0_i32, %c0_i32_0 : i32, i32
  }
  func.func @transform_6(%arg0: i32) -> (i32, i32) {
    %c0_i32 = arith.constant 0 : i32
    %c0_i32_0 = arith.constant 0 : i32
    %c0_i32_1 = arith.constant 0 : i32
    return %c0_i32, %c0_i32_0 : i32, i32
  }
  func.func @transform_7(%arg0: i32) -> (i32, i32, i32) {
    %c0_i32 = arith.constant 0 : i32
    %c0_i32_0 = arith.constant 0 : i32
    %c0_i32_1 = arith.constant 0 : i32
    return %arg0, %c0_i32, %c0_i32_0 : i32, i32, i32
  }
}

</mosaic_0001>

<bundles_post_ra>
// kernel: _forward_impl.1
= control target key start
LH: loop header
LB: loop body
LE: loop exit
PB: predicated region body
PF: predicated region fallthrough
CT: control target
= control target key end

     0   :  { %12 = vsyncpa [#allocation3], 0  ;;  %s842_s0 = inlined_call_operand.hbm [shape: f32[8,32], index: 0, kind: input, shape index: {}]   ;;  %s843_s1 = inlined_call_operand.hbm [shape: f32[32,128], index: 1, kind: input, shape index: {}]   ;;  %s844_s2 = inlined_call_operand.vmem [shape: f32[1,128], index: 2, kind: input, shape index: {}]   ;;  %s845_s3 = inlined_call_operand.hbm [shape: f32[128,128], index: 3, kind: input, shape index: {}]   ;;  %s846_s4 = inlined_call_operand.vmem [shape: f32[1,128], index: 4, kind: input, shape index: {}]   ;;  %s847_s5 = inlined_call_operand.hbm [shape: f32[128,128], index: 5, kind: input, shape index: {}]   ;;  %s848_s6 = inlined_call_operand.vmem [shape: f32[1,128], index: 6, kind: input, shape index: {}]   ;;  %s849_s7 = inlined_call_operand.hbm [shape: f32[1,1,8], index: 7, kind: output, shape index: {}]  }
   0x1   :  { %13 = vsyncpa [#allocation6], 0 }
   0x2   :  { %14 = vsyncpa [#allocation9], 0 }
   0x3   :  { %15 = vsyncpa [#allocation4], 0  ;;  %s693_s24 = smov [#allocation5]   ;;  %s575_s28 = scalar_lea.hbm %s843_s1, 512 }
   0x4   :  { %s31_s25 = sshll.u32 %s693_s24, 4  ;;  %p576_p0 = scmp.ne.s32.totalorder %s843_s1, %s575_s28  ;;  %s32_s25 = int_to_ptr.vmem [resolvable:$true] %s31_s25 }
   0x5   :  { %p579_p1 = scmp.lt.u32.totalorder %s575_s28, %s843_s1 }
   0x7   :  { %p581_p2 = pnand %p579_p1, %p576_p0 }
   0x9   :  { %584 = shalt.err (!%p581_p2)
}
   0xa   :  { %s585_s10 = scalar_lea.vmem %s32_s25, 512  ;;  %p590_p4 = scmp.lt.s32.totalorder %s32_s25, %s32_s25 }
   0xb   :  { %p586_p3 = scmp.ne.s32.totalorder %s32_s25, %s585_s10  ;;  %p591_p5 = scmp.lt.s32.totalorder %s585_s10, %s585_s10 }
   0xd   :  { %p592_p6 = por %p591_p5, %p590_p4 }
   0xf   :  { %p593_p7 = pnand %p592_p6, %p586_p3 }
  0x11   :  { %596 = shalt.err (!%p593_p7)
}
  0x12   :  { %s694_s11 = smov 128   ;;  %s695_s12 = smov 8  }
  0x13   :  { %37 = dma.hbm_to_vmem [thread:$0]  %s843_s1, 512, %s32_s25, [#allocation6], %s694_s11, %s694_s11, %s695_s12  }
  0x14   :  { %s696_s15 = smov [#allocation2]   ;;  %s697_s17 = smov [#allocation7]  }
  0x15   :  { %s22_s16 = sshll.u32 %s696_s15, 4  ;;  %s45_s18 = sshll.u32 %s697_s17, 4  ;;  %s23_s16 = int_to_ptr.vmem [resolvable:$true] %s22_s16  ;;  %s46_s18 = int_to_ptr.vmem [resolvable:$true] %s45_s18 }
  0x16   :  { %s597_s21 = scalar_lea.hbm %s842_s0, 128 }
  0x17   :  { %p598_p8 = scmp.ne.s32.totalorder %s842_s0, %s597_s21  ;;  %p601_p9 = scmp.lt.u32.totalorder %s597_s21, %s842_s0 }
  0x19   :  { %p603_p10 = pnand %p601_p9, %p598_p8 }
  0x1b   :  { %606 = shalt.err (!%p603_p10)
}
  0x1c   :  { %s607_s1 = scalar_lea.vmem %s23_s16, 128  ;;  %p612_p12 = scmp.lt.s32.totalorder %s23_s16, %s23_s16 }
  0x1d   :  { %p608_p11 = scmp.ne.s32.totalorder %s23_s16, %s607_s1  ;;  %p613_p13 = scmp.lt.s32.totalorder %s607_s1, %s607_s1 }
  0x1f   :  { %p614_p0 = por %p613_p13, %p612_p12 }
  0x21   :  { %p615_p1 = pnand %p614_p0, %p608_p11 }
  0x23   :  { %618 = shalt.err (!%p615_p1)
}
  0x24   :  { %25 = dma.hbm_to_vmem [thread:$0]  %s842_s0, 128, %s23_s16, [#allocation3]  }
  0x25   :  { %s619_s30 = scalar_lea.hbm %s845_s3, 2048 }
  0x26   :  { %p620_p2 = scmp.ne.s32.totalorder %s845_s3, %s619_s30  ;;  %p623_p3 = scmp.lt.u32.totalorder %s619_s30, %s845_s3 }
  0x28   :  { %p625_p4 = pnand %p623_p3, %p620_p2 }
  0x2a   :  { %628 = shalt.err (!%p625_p4)
}
  0x2b   :  { %s629_s14 = scalar_lea.vmem %s46_s18, 2048  ;;  %p634_p6 = scmp.lt.s32.totalorder %s46_s18, %s46_s18 }
  0x2c   :  { %p630_p5 = scmp.ne.s32.totalorder %s46_s18, %s629_s14  ;;  %p635_p7 = scmp.lt.s32.totalorder %s629_s14, %s629_s14 }
  0x2e   :  { %p636_p8 = por %p635_p7, %p634_p6 }
  0x30   :  { %p637_p9 = pnand %p636_p8, %p630_p5 }
  0x32   :  { %640 = shalt.err (!%p637_p9)
}
  0x33   :  { %51 = dma.hbm_to_vmem [thread:$0]  %s845_s3, 2048, %s46_s18, [#allocation6], %s694_s11, %s694_s11, %s695_s12  }
  0x34   :  { %s698_s16 = smov [#allocation8]   ;;  %s641_s21 = scalar_lea.hbm %s847_s5, 2048 }
  0x35   :  { %s59_s17 = sshll.u32 %s698_s16, 4  ;;  %p642_p10 = scmp.ne.s32.totalorder %s847_s5, %s641_s21  ;;  %s60_s17 = int_to_ptr.vmem [resolvable:$true] %s59_s17 }
  0x36   :  { %p645_p11 = scmp.lt.u32.totalorder %s641_s21, %s847_s5 }
  0x38   :  { %p647_p12 = pnand %p645_p11, %p642_p10 }
  0x3a   :  { %650 = shalt.err (!%p647_p12)
}
  0x3b   :  { %s651_s1 = scalar_lea.vmem %s60_s17, 2048  ;;  %p656_p0 = scmp.lt.s32.totalorder %s60_s17, %s60_s17 }
  0x3c   :  { %p652_p13 = scmp.ne.s32.totalorder %s60_s17, %s651_s1  ;;  %p657_p1 = scmp.lt.s32.totalorder %s651_s1, %s651_s1 }
  0x3e   :  { %p658_p2 = por %p657_p1, %p656_p0 }
  0x40   :  { %p659_p3 = pnand %p658_p2, %p652_p13 }
  0x42   :  { %662 = shalt.err (!%p659_p3)
}
  0x43   :  { %65 = dma.hbm_to_vmem [thread:$0]  %s847_s5, 2048, %s60_s17, [#allocation9], %s694_s11, %s694_s11, %s695_s12  }
  0x44   :  { %685 = dma.done.wait [#allocation3], 128  }
  0x45   :  { %686 = vsyncadd [#allocation3], 4294967168 }
  0x46   :  { %687 = dma.done.wait [#allocation6], 2560  }
  0x47   :  { %688 = vsyncadd [#allocation6], 4294964736 }
  0x48   :  { %689 = dma.done.wait [#allocation9], 2048  }
  0x49   :  { %690 = vsyncadd [#allocation9], 4294965248  ;;  %v699_v0 = vmov 0.0|0.0   ;;  %vm700_vm0 = vmmov 0   ;;  %v701_v1 = vmov 0.0   ;;  %v81_v2 = vld [vmem:[#allocation5] sm:$0xff] }
  0x4a   :  { %511 = vmatprep.subr.bf16.mxu0 %v699_v0  ;;  %438 = vmatprep.mubr.msk.f32.mxu0 %vm700_vm0, %v701_v1  ;;  %v82_v3 = vld [vmem:[#allocation5 + $0x8] sm:$0xff]  ;;  %v83_v4 = vld [vmem:[#allocation5 + $0x10] sm:$0xff]  ;;  %v84_v6 = vld [vmem:[#allocation5 + $0x18] sm:$0xff]  ;;  %vm92_vm1 = vcmask 261120   ;;  %vm368_vm4 = vcmask 57344  }
  0x4b   :  { %517 = vmatprep.subr.bf16.mxu1 %v699_v0  ;;  %473 = vmatprep.mubr.msk.f32.mxu1 %vm700_vm0, %v701_v1  ;;  %v512_v5 = vpack.c.bf16 %v82_v3, %v81_v2  ;;  %v169_v7 = vld [vmem:[#allocation7] sm:$0xff]  ;;  %v170_v8 = vld [vmem:[#allocation7 + $0x8] sm:$0xff]  ;;  %v171_v9 = vld [vmem:[#allocation7 + $0x10] sm:$0xff]  ;;  %v515_v11 = vpack.c.bf16 %v84_v6, %v83_v4 }
  0x4c   :  { %v172_v10 = vld [vmem:[#allocation7 + $0x18] sm:$0xff]  ;;  %v518_v12 = vpack.c.bf16 %v170_v8, %v169_v7  ;;  %v173_v14 = vld [vmem:[#allocation7 + $0x20] sm:$0xff]  ;;  %v174_v15 = vld [vmem:[#allocation7 + $0x28] sm:$0xff] }
  0x4d   :  { %513 = vmatpush3.bf16.msra.mxu0 %v512_v5  ;;  %v521_v13 = vpack.c.bf16 %v172_v10, %v171_v9  ;;  %v80_v16 = vld [vmem:[#allocation2] sm:$0xff]  ;;  %v524_v17 = vpack.c.bf16 %v174_v15, %v173_v14  ;;  %v175_v18 = vld [vmem:[#allocation7 + $0x30] sm:$0xff]  ;;  %v177_v21 = vld [vmem:[#allocation7 + $0x40] sm:$0xff]  ;;  %v361_v9 = vlaneseq }
  0x4e   :  { %514 = vmatprep.subr.bf16.mxu0 %v699_v0  ;;  %519 = vmatpush3.bf16.msra.mxu1 %v518_v12  ;;  %v176_v19 = vld [vmem:[#allocation7 + $0x38] sm:$0xff]  ;;  %v178_v22 = vld [vmem:[#allocation7 + $0x48] sm:$0xff]  ;;  %v179_v24 = vld [vmem:[#allocation7 + $0x50] sm:$0xff] }
  0x4f   :  { %520 = vmatprep.subr.bf16.mxu1 %v699_v0  ;;  %v527_v20 = vpack.c.bf16 %v176_v19, %v175_v18  ;;  %v530_v23 = vpack.c.bf16 %v178_v22, %v177_v21  ;;  %v180_v25 = vld [vmem:[#allocation7 + $0x58] sm:$0xff]  ;;  %v181_v27 = vld [vmem:[#allocation7 + $0x60] sm:$0xff]  ;;  %v182_v28 = vld [vmem:[#allocation7 + $0x68] sm:$0xff]  ;;  %v362_v10 = vand.u32 127, %v361_v9 }
  0x50   :  { %v533_v26 = vpack.c.bf16 %v180_v25, %v179_v24  ;;  %v536_v29 = vpack.c.bf16 %v182_v28, %v181_v27  ;;  %v183_v30 = vld [vmem:[#allocation7 + $0x70] sm:$0xff]  ;;  %v184_v31 = vld [vmem:[#allocation7 + $0x78] sm:$0xff]  ;;  %v265_v33 = vld [vmem:[#allocation8] sm:$0xff] }
  0x51   :  { %516 = vmatpush3.bf16.msra.mxu0 %v515_v11  ;;  %v539_v32 = vpack.c.bf16 %v184_v31, %v183_v30  ;;  %v266_v34 = vld [vmem:[#allocation8 + $0x8] sm:$0xff]  ;;  %v267_v35 = vld [vmem:[#allocation8 + $0x10] sm:$0xff]  ;;  %v268_v37 = vld [vmem:[#allocation8 + $0x18] sm:$0xff]  ;;  %v364_v11 = vshrl.u32 %v361_v9, 7 }
  0x52   :  { %541 = vmatprep.subr.bf16.mxu0 %v699_v0  ;;  %522 = vmatpush3.bf16.msra.mxu1 %v521_v13  ;;  %v542_v36 = vpack.c.bf16 %v266_v34, %v265_v33  ;;  %v545_v38 = vpack.c.bf16 %v268_v37, %v267_v35  ;;  %v269_v39 = vld [vmem:[#allocation8 + $0x20] sm:$0xff]  ;;  %v270_v40 = vld [vmem:[#allocation8 + $0x28] sm:$0xff]  ;;  %v271_v42 = vld [vmem:[#allocation8 + $0x30] sm:$0xff] }
  0x53   :  { %523 = vmatprep.subr.bf16.mxu1 %v699_v0  ;;  %v548_v41 = vpack.c.bf16 %v270_v40, %v269_v39  ;;  %v272_v43 = vld [vmem:[#allocation8 + $0x38] sm:$0xff]  ;;  %v273_v45 = vld [vmem:[#allocation8 + $0x40] sm:$0xff]  ;;  %v274_v46 = vld [vmem:[#allocation8 + $0x48] sm:$0xff]  ;;  %v365_v12 = vsub.s32 %v362_v10, %v364_v11 }
  0x54   :  { %439 = vmatmul.mubr.msk.f32.vlgmr.msra.gmra.mrb[0].mxu0 %vm92_vm1, %v80_v16  ;;  %v551_v44 = vpack.c.bf16 %v272_v43, %v271_v42  ;;  %v554_v47 = vpack.c.bf16 %v274_v46, %v273_v45  ;;  %v275_v48 = vld [vmem:[#allocation8 + $0x50] sm:$0xff]  ;;  %v276_v49 = vld [vmem:[#allocation8 + $0x58] sm:$0xff]  ;;  %v277_v51 = vld [vmem:[#allocation8 + $0x60] sm:$0xff] }
  0x55   :  { %508 = vmatprep.mubr.msk.f32.mxu0 %vm700_vm0, %v701_v1  ;;  %543 = vmatpush3.bf16.msra.mxu0 %v542_v36  ;;  %v557_v50 = vpack.c.bf16 %v276_v49, %v275_v48  ;;  %v278_v52 = vld [vmem:[#allocation8 + $0x68] sm:$0xff]  ;;  %v387_v54 = vld [vmem:[%s844_s2] ss:$0 sm:$0xff]  ;;  %v279_v60 = vld [vmem:[#allocation8 + $0x70] sm:$0xff] }
  0x56   :  { %525 = vmatpush3.bf16.msra.mxu1 %v524_v17  ;;  %544 = vmatprep.subr.bf16.mxu0 %v699_v0  ;;  %v560_v53 = vpack.c.bf16 %v278_v52, %v277_v51  ;;  %v280_v61 = vld [vmem:[#allocation8 + $0x78] sm:$0xff] }
  0x57   :  { %526 = vmatprep.subr.bf16.mxu1 %v699_v0  ;;  %v563_v62 = vpack.c.bf16 %v280_v61, %v279_v60  ;;  %v389_v63 = vld [vmem:[%s846_s4] ss:$0 sm:$0xff]  ;;  %s702_s4 = smov [#allocation10]  }
  0x58   :  { %v390_v5 = vld [vmem:[%s848_s6] ss:$0 sm:$0xff]  ;;  %s376_s28 = sshll.u32 %s702_s4, 4  ;;  %s377_s28 = int_to_ptr.vmem [resolvable:$true] %s376_s28 }
  0x59   :  { %546 = vmatpush3.bf16.msra.mxu0 %v545_v38  ;;  %s663_s29 = scalar_lea.vmem %s377_s28, 16  ;;  %s667_s30 = scalar_lea.vmem %s377_s28, 32 }
  0x5a   :  { %528 = vmatpush3.bf16.msra.mxu1 %v527_v20  ;;  %547 = vmatprep.subr.bf16.mxu0 %v699_v0  ;;  %p664_p4 = scmp.ne.s32.totalorder %s377_s28, %s663_s29  ;;  %p668_p5 = scmp.lt.s32.totalorder %s377_s28, %s377_s28 }
  0x5b   :  { %529 = vmatprep.subr.bf16.mxu1 %v699_v0  ;;  %p669_p6 = scmp.lt.s32.totalorder %s667_s30, %s663_s29 }
  0x5d   :  { %549 = vmatpush3.bf16.msra.mxu0 %v548_v41  ;;  %p670_p7 = por %p669_p6, %p668_p5 }
  0x5e   :  { %531 = vmatpush3.bf16.msra.mxu1 %v530_v23  ;;  %550 = vmatprep.subr.bf16.mxu0 %v699_v0 }
  0x5f   :  { %532 = vmatprep.subr.bf16.mxu1 %v699_v0  ;;  %p671_p8 = pnand %p670_p7, %p664_p4 }
  0x61   :  { %552 = vmatpush3.bf16.msra.mxu0 %v551_v44 }
  0x62   :  { %534 = vmatpush3.bf16.msra.mxu1 %v533_v26  ;;  %553 = vmatprep.subr.bf16.mxu0 %v699_v0 }
  0x63   :  { %535 = vmatprep.subr.bf16.mxu1 %v699_v0 }
  0x65   :  { %555 = vmatpush3.bf16.msra.mxu0 %v554_v47 }
  0x66   :  { %537 = vmatpush3.bf16.msra.mxu1 %v536_v29  ;;  %556 = vmatprep.subr.bf16.mxu0 %v699_v0 }
  0x67   :  { %538 = vmatprep.subr.bf16.mxu1 %v699_v0 }
  0x69   :  { %558 = vmatpush3.bf16.msra.mxu0 %v557_v50 }
  0x6a   :  { %540 = vmatpush3.bf16.msra.mxu1 %v539_v32  ;;  %559 = vmatprep.subr.bf16.mxu0 %v699_v0 }
  0x6d   :  { %561 = vmatpush3.bf16.msra.mxu0 %v560_v53 }
  0x6e   :  { %562 = vmatprep.subr.bf16.mxu0 %v699_v0 }
  0x71   :  { %564 = vmatpush3.bf16.msra.mxu0 %v563_v62 }
 0x127   :  { %v162_v55 = vpop.f32.mrb[0].mxu0 }
 0x128   :  { %v163_v56 = vadd.f32 %v387_v54, %v162_v55  ;;  %v440_v57 = vpop.f32.mrb[1].mxu0 }
 0x12a   :  { %v167_v58 = vmul.f32 0.2, %v163_v56  ;;  %vm166_vm2 = vcmp.gt.f32.partialorder %v163_v56, 0.0 }
 0x12c   :  { %v168_v59 = vsel %vm166_vm2, %v163_v56, %v167_v58 }
 0x12d   :  { %474 = vmatmul.mubr.f32.vlgmr.msra.gmra.mrb[0].mxu1 %v168_v59 }
 0x200   :  { %v258_v0 = vpop.f32.mrb[0].mxu1 }
 0x201   :  { %v259_v1 = vadd.f32 %v389_v63, %v258_v0  ;;  %v475_v2 = vpop.f32.mrb[1].mxu1 }
 0x203   :  { %vm262_vm3 = vcmp.gt.f32.partialorder %v259_v1, 0.0  ;;  %v263_v3 = vmul.f32 0.2, %v259_v1 }
 0x205   :  { %v264_v4 = vsel %vm262_vm3, %v259_v1, %v263_v3 }
 0x206   :  { %509 = vmatmul.mubr.f32.vlgmr.msra.gmra.mrb[2].mxu0 %v264_v4 }
 0x2d9   :  { %v354_v6 = vpop.f32.mrb[2].mxu0 }
 0x2da   :  { %v510_v7 = vpop.f32.mrb[3].mxu0  ;;  %v355_v8 = vadd.f32 %v390_v5, %v354_v6 }
 0x2dc   :  { %358 = vadd.xlane.f32.xlu0 %v355_v8 }
 0x369   :  { %v359_v13 = vpop.xlane.xlu0 %358 }
 0x36a   :  { %v366_v14 = vrot.slane %v359_v13, %v365_v12 }
 0x36c   :  { %369 = vst.msk [vmem:[#allocation10] sm:$0x1] %vm368_vm4, %v366_v14 }
 0x36d   :  { %674 = shalt.err (!%p671_p8)
}
 0x36e   :  { %s675_s9 = scalar_lea.hbm %s849_s7, 16 }
 0x36f   :  { %p676_p9 = scmp.ne.s32.totalorder %s849_s7, %s675_s9  ;;  %p679_p10 = scmp.lt.u32.totalorder %s675_s9, %s849_s7 }
 0x371   :  { %p681_p11 = pnand %p679_p10, %p676_p9 }
 0x373   :  { %684 = shalt.err (!%p681_p11)
}
 0x374   :  { %379 = dma.vmem_to_hbm [thread:$0]  %s377_s28, 16, %s849_s7, [#allocation4]  }
 0x375   :  { %691 = dma.done.wait [#allocation4], 16  }
 0x376   :  { %692 = vsyncadd [#allocation4], 4294967280 }
 0x377   :  { %383 = vsyncpa [#allocation3], 1 }
 0x378   :  { %384 = vsyncpa [#allocation6], 1 }
 0x379   :  { %385 = vsyncpa [#allocation9], 1 }
 0x37a   :  { %386 = vsyncpa [#allocation4], 1 }

// kernel: _forward_impl.1
= control target key start
LH: loop header
LB: loop body
LE: loop exit
PB: predicated region body
PF: predicated region fallthrough
CT: control target
= control target key end

     0   :  { %12 = vsyncpa [#allocation3], 0  ;;  %s842_s0 = inlined_call_operand.hbm [shape: f32[8,32], index: 0, kind: input, shape index: {}]   ;;  %s843_s1 = inlined_call_operand.hbm [shape: f32[32,128], index: 1, kind: input, shape index: {}]   ;;  %s844_s2 = inlined_call_operand.vmem [shape: f32[1,128], index: 2, kind: input, shape index: {}]   ;;  %s845_s3 = inlined_call_operand.hbm [shape: f32[128,128], index: 3, kind: input, shape index: {}]   ;;  %s846_s4 = inlined_call_operand.vmem [shape: f32[1,128], index: 4, kind: input, shape index: {}]   ;;  %s847_s5 = inlined_call_operand.hbm [shape: f32[128,128], index: 5, kind: input, shape index: {}]   ;;  %s848_s6 = inlined_call_operand.vmem [shape: f32[1,128], index: 6, kind: input, shape index: {}]   ;;  %s849_s7 = inlined_call_operand.hbm [shape: f32[1,1,8], index: 7, kind: output, shape index: {}]  }
   0x1   :  { %13 = vsyncpa [#allocation6], 0 }
   0x2   :  { %14 = vsyncpa [#allocation9], 0 }
   0x3   :  { %15 = vsyncpa [#allocation4], 0  ;;  %s693_s24 = smov [#allocation5]   ;;  %s575_s28 = scalar_lea.hbm %s843_s1, 512 }
   0x4   :  { %s31_s25 = sshll.u32 %s693_s24, 4  ;;  %p576_p0 = scmp.ne.s32.totalorder %s843_s1, %s575_s28  ;;  %s32_s25 = int_to_ptr.vmem [resolvable:$true] %s31_s25 }
   0x5   :  { %p579_p1 = scmp.lt.u32.totalorder %s575_s28, %s843_s1 }
   0x7   :  { %p581_p2 = pnand %p579_p1, %p576_p0 }
   0x9   :  { %584 = shalt.err (!%p581_p2)
}
   0xa   :  { %s585_s10 = scalar_lea.vmem %s32_s25, 512  ;;  %p590_p4 = scmp.lt.s32.totalorder %s32_s25, %s32_s25 }
   0xb   :  { %p586_p3 = scmp.ne.s32.totalorder %s32_s25, %s585_s10  ;;  %p591_p5 = scmp.lt.s32.totalorder %s585_s10, %s585_s10 }
   0xd   :  { %p592_p6 = por %p591_p5, %p590_p4 }
   0xf   :  { %p593_p7 = pnand %p592_p6, %p586_p3 }
  0x11   :  { %596 = shalt.err (!%p593_p7)
}
  0x12   :  { %s694_s11 = smov 128   ;;  %s695_s12 = smov 8  }
  0x13   :  { %37 = dma.hbm_to_vmem [thread:$0]  %s843_s1, 512, %s32_s25, [#allocation6], %s694_s11, %s694_s11, %s695_s12  }
  0x14   :  { %s696_s15 = smov [#allocation2]   ;;  %s697_s17 = smov [#allocation7]  }
  0x15   :  { %s22_s16 = sshll.u32 %s696_s15, 4  ;;  %s45_s18 = sshll.u32 %s697_s17, 4  ;;  %s23_s16 = int_to_ptr.vmem [resolvable:$true] %s22_s16  ;;  %s46_s18 = int_to_ptr.vmem [resolvable:$true] %s45_s18 }
  0x16   :  { %s597_s21 = scalar_lea.hbm %s842_s0, 128 }
  0x17   :  { %p598_p8 = scmp.ne.s32.totalorder %s842_s0, %s597_s21  ;;  %p601_p9 = scmp.lt.u32.totalorder %s597_s21, %s842_s0 }
  0x19   :  { %p603_p10 = pnand %p601_p9, %p598_p8 }
  0x1b   :  { %606 = shalt.err (!%p603_p10)
}
  0x1c   :  { %s607_s1 = scalar_lea.vmem %s23_s16, 128  ;;  %p612_p12 = scmp.lt.s32.totalorder %s23_s16, %s23_s16 }
  0x1d   :  { %p608_p11 = scmp.ne.s32.totalorder %s23_s16, %s607_s1  ;;  %p613_p13 = scmp.lt.s32.totalorder %s607_s1, %s607_s1 }
  0x1f   :  { %p614_p0 = por %p613_p13, %p612_p12 }
  0x21   :  { %p615_p1 = pnand %p614_p0, %p608_p11 }
  0x23   :  { %618 = shalt.err (!%p615_p1)
}
  0x24   :  { %25 = dma.hbm_to_vmem [thread:$0]  %s842_s0, 128, %s23_s16, [#allocation3]  }
  0x25   :  { %s619_s30 = scalar_lea.hbm %s845_s3, 2048 }
  0x26   :  { %p620_p2 = scmp.ne.s32.totalorder %s845_s3, %s619_s30  ;;  %p623_p3 = scmp.lt.u32.totalorder %s619_s30, %s845_s3 }
  0x28   :  { %p625_p4 = pnand %p623_p3, %p620_p2 }
  0x2a   :  { %628 = shalt.err (!%p625_p4)
}
  0x2b   :  { %s629_s14 = scalar_lea.vmem %s46_s18, 2048  ;;  %p634_p6 = scmp.lt.s32.totalorder %s46_s18, %s46_s18 }
  0x2c   :  { %p630_p5 = scmp.ne.s32.totalorder %s46_s18, %s629_s14  ;;  %p635_p7 = scmp.lt.s32.totalorder %s629_s14, %s629_s14 }
  0x2e   :  { %p636_p8 = por %p635_p7, %p634_p6 }
  0x30   :  { %p637_p9 = pnand %p636_p8, %p630_p5 }
  0x32   :  { %640 = shalt.err (!%p637_p9)
}
  0x33   :  { %51 = dma.hbm_to_vmem [thread:$0]  %s845_s3, 2048, %s46_s18, [#allocation6], %s694_s11, %s694_s11, %s695_s12  }
  0x34   :  { %s698_s16 = smov [#allocation8]   ;;  %s641_s21 = scalar_lea.hbm %s847_s5, 2048 }
  0x35   :  { %s59_s17 = sshll.u32 %s698_s16, 4  ;;  %p642_p10 = scmp.ne.s32.totalorder %s847_s5, %s641_s21  ;;  %s60_s17 = int_to_ptr.vmem [resolvable:$true] %s59_s17 }
  0x36   :  { %p645_p11 = scmp.lt.u32.totalorder %s641_s21, %s847_s5 }
  0x38   :  { %p647_p12 = pnand %p645_p11, %p642_p10 }
  0x3a   :  { %650 = shalt.err (!%p647_p12)
}
  0x3b   :  { %s651_s1 = scalar_lea.vmem %s60_s17, 2048  ;;  %p656_p0 = scmp.lt.s32.totalorder %s60_s17, %s60_s17 }
  0x3c   :  { %p652_p13 = scmp.ne.s32.totalorder %s60_s17, %s651_s1  ;;  %p657_p1 = scmp.lt.s32.totalorder %s651_s1, %s651_s1 }
  0x3e   :  { %p658_p2 = por %p657_p1, %p656_p0 }
  0x40   :  { %p659_p3 = pnand %p658_p2, %p652_p13 }
  0x42   :  { %662 = shalt.err (!%p659_p3)
}
  0x43   :  { %65 = dma.hbm_to_vmem [thread:$0]  %s847_s5, 2048, %s60_s17, [#allocation9], %s694_s11, %s694_s11, %s695_s12  }
  0x44   :  { %685 = dma.done.wait [#allocation3], 128  }
  0x45   :  { %686 = vsyncadd [#allocation3], 4294967168 }
  0x46   :  { %687 = dma.done.wait [#allocation6], 2560  }
  0x47   :  { %688 = vsyncadd [#allocation6], 4294964736 }
  0x48   :  { %689 = dma.done.wait [#allocation9], 2048  }
  0x49   :  { %690 = vsyncadd [#allocation9], 4294965248  ;;  %v699_v0 = vmov 0.0|0.0   ;;  %vm700_vm0 = vmmov 0   ;;  %v701_v1 = vmov 0.0   ;;  %v81_v2 = vld [vmem:[#allocation5] sm:$0xff] }
  0x4a   :  { %511 = vmatprep.subr.bf16.mxu0 %v699_v0  ;;  %438 = vmatprep.mubr.msk.f32.mxu0 %vm700_vm0, %v701_v1  ;;  %v82_v3 = vld [vmem:[#allocation5 + $0x8] sm:$0xff]  ;;  %v83_v4 = vld [vmem:[#allocation5 + $0x10] sm:$0xff]  ;;  %v84_v6 = vld [vmem:[#allocation5 + $0x18] sm:$0xff]  ;;  %vm92_vm1 = vcmask 261120   ;;  %vm368_vm4 = vcmask 57344  }
  0x4b   :  { %517 = vmatprep.subr.bf16.mxu1 %v699_v0  ;;  %473 = vmatprep.mubr.msk.f32.mxu1 %vm700_vm0, %v701_v1  ;;  %v512_v5 = vpack.c.bf16 %v82_v3, %v81_v2  ;;  %v169_v7 = vld [vmem:[#allocation7] sm:$0xff]  ;;  %v170_v8 = vld [vmem:[#allocation7 + $0x8] sm:$0xff]  ;;  %v171_v9 = vld [vmem:[#allocation7 + $0x10] sm:$0xff]  ;;  %v515_v11 = vpack.c.bf16 %v84_v6, %v83_v4 }
  0x4c   :  { %v172_v10 = vld [vmem:[#allocation7 + $0x18] sm:$0xff]  ;;  %v518_v12 = vpack.c.bf16 %v170_v8, %v169_v7  ;;  %v173_v14 = vld [vmem:[#allocation7 + $0x20] sm:$0xff]  ;;  %v174_v15 = vld [vmem:[#allocation7 + $0x28] sm:$0xff] }
  0x4d   :  { %513 = vmatpush3.bf16.msra.mxu0 %v512_v5  ;;  %v521_v13 = vpack.c.bf16 %v172_v10, %v171_v9  ;;  %v80_v16 = vld [vmem:[#allocation2] sm:$0xff]  ;;  %v524_v17 = vpack.c.bf16 %v174_v15, %v173_v14  ;;  %v175_v18 = vld [vmem:[#allocation7 + $0x30] sm:$0xff]  ;;  %v177_v21 = vld [vmem:[#allocation7 + $0x40] sm:$0xff]  ;;  %v361_v9 = vlaneseq }
  0x4e   :  { %514 = vmatprep.subr.bf16.mxu0 %v699_v0  ;;  %519 = vmatpush3.bf16.msra.mxu1 %v518_v12  ;;  %v176_v19 = vld [vmem:[#allocation7 + $0x38] sm:$0xff]  ;;  %v178_v22 = vld [vmem:[#allocation7 + $0x48] sm:$0xff]  ;;  %v179_v24 = vld [vmem:[#allocation7 + $0x50] sm:$0xff] }
  0x4f   :  { %520 = vmatprep.subr.bf16.mxu1 %v699_v0  ;;  %v527_v20 = vpack.c.bf16 %v176_v19, %v175_v18  ;;  %v530_v23 = vpack.c.bf16 %v178_v22, %v177_v21  ;;  %v180_v25 = vld [vmem:[#allocation7 + $0x58] sm:$0xff]  ;;  %v181_v27 = vld [vmem:[#allocation7 + $0x60] sm:$0xff]  ;;  %v182_v28 = vld [vmem:[#allocation7 + $0x68] sm:$0xff]  ;;  %v362_v10 = vand.u32 127, %v361_v9 }
  0x50   :  { %v533_v26 = vpack.c.bf16 %v180_v25, %v179_v24  ;;  %v536_v29 = vpack.c.bf16 %v182_v28, %v181_v27  ;;  %v183_v30 = vld [vmem:[#allocation7 + $0x70] sm:$0xff]  ;;  %v184_v31 = vld [vmem:[#allocation7 + $0x78] sm:$0xff]  ;;  %v265_v33 = vld [vmem:[#allocation8] sm:$0xff] }
  0x51   :  { %516 = vmatpush3.bf16.msra.mxu0 %v515_v11  ;;  %v539_v32 = vpack.c.bf16 %v184_v31, %v183_v30  ;;  %v266_v34 = vld [vmem:[#allocation8 + $0x8] sm:$0xff]  ;;  %v267_v35 = vld [vmem:[#allocation8 + $0x10] sm:$0xff]  ;;  %v268_v37 = vld [vmem:[#allocation8 + $0x18] sm:$0xff]  ;;  %v364_v11 = vshrl.u32 %v361_v9, 7 }
  0x52   :  { %541 = vmatprep.subr.bf16.mxu0 %v699_v0  ;;  %522 = vmatpush3.bf16.msra.mxu1 %v521_v13  ;;  %v542_v36 = vpack.c.bf16 %v266_v34, %v265_v33  ;;  %v545_v38 = vpack.c.bf16 %v268_v37, %v267_v35  ;;  %v269_v39 = vld [vmem:[#allocation8 + $0x20] sm:$0xff]  ;;  %v270_v40 = vld [vmem:[#allocation8 + $0x28] sm:$0xff]  ;;  %v271_v42 = vld [vmem:[#allocation8 + $0x30] sm:$0xff] }
  0x53   :  { %523 = vmatprep.subr.bf16.mxu1 %v699_v0  ;;  %v548_v41 = vpack.c.bf16 %v270_v40, %v269_v39  ;;  %v272_v43 = vld [vmem:[#allocation8 + $0x38] sm:$0xff]  ;;  %v273_v45 = vld [vmem:[#allocation8 + $0x40] sm:$0xff]  ;;  %v274_v46 = vld [vmem:[#allocation8 + $0x48] sm:$0xff]  ;;  %v365_v12 = vsub.s32 %v362_v10, %v364_v11 }
  0x54   :  { %439 = vmatmul.mubr.msk.f32.vlgmr.msra.gmra.mrb[0].mxu0 %vm92_vm1, %v80_v16  ;;  %v551_v44 = vpack.c.bf16 %v272_v43, %v271_v42  ;;  %v554_v47 = vpack.c.bf16 %v274_v46, %v273_v45  ;;  %v275_v48 = vld [vmem:[#allocation8 + $0x50] sm:$0xff]  ;;  %v276_v49 = vld [vmem:[#allocation8 + $0x58] sm:$0xff]  ;;  %v277_v51 = vld [vmem:[#allocation8 + $0x60] sm:$0xff] }
  0x55   :  { %508 = vmatprep.mubr.msk.f32.mxu0 %vm700_vm0, %v701_v1  ;;  %543 = vmatpush3.bf16.msra.mxu0 %v542_v36  ;;  %v557_v50 = vpack.c.bf16 %v276_v49, %v275_v48  ;;  %v278_v52 = vld [vmem:[#allocation8 + $0x68] sm:$0xff]  ;;  %v387_v54 = vld [vmem:[%s844_s2] ss:$0 sm:$0xff]  ;;  %v279_v60 = vld [vmem:[#allocation8 + $0x70] sm:$0xff] }
  0x56   :  { %525 = vmatpush3.bf16.msra.mxu1 %v524_v17  ;;  %544 = vmatprep.subr.bf16.mxu0 %v699_v0  ;;  %v560_v53 = vpack.c.bf16 %v278_v52, %v277_v51  ;;  %v280_v61 = vld [vmem:[#allocation8 + $0x78] sm:$0xff] }
  0x57   :  { %526 = vmatprep.subr.bf16.mxu1 %v699_v0  ;;  %v563_v62 = vpack.c.bf16 %v280_v61, %v279_v60  ;;  %v389_v63 = vld [vmem:[%s846_s4] ss:$0 sm:$0xff]  ;;  %s702_s4 = smov [#allocation10]  }
  0x58   :  { %v390_v5 = vld [vmem:[%s848_s6] ss:$0 sm:$0xff]  ;;  %s376_s28 = sshll.u32 %s702_s4, 4  ;;  %s377_s28 = int_to_ptr.vmem [resolvable:$true] %s376_s28 }
  0x59   :  { %546 = vmatpush3.bf16.msra.mxu0 %v545_v38  ;;  %s663_s29 = scalar_lea.vmem %s377_s28, 16  ;;  %s667_s30 = scalar_lea.vmem %s377_s28, 32 }
  0x5a   :  { %528 = vmatpush3.bf16.msra.mxu1 %v527_v20  ;;  %547 = vmatprep.subr.bf16.mxu0 %v699_v0  ;;  %p664_p4 = scmp.ne.s32.totalorder %s377_s28, %s663_s29  ;;  %p668_p5 = scmp.lt.s32.totalorder %s377_s28, %s377_s28 }
  0x5b   :  { %529 = vmatprep.subr.bf16.mxu1 %v699_v0  ;;  %p669_p6 = scmp.lt.s32.totalorder %s667_s30, %s663_s29 }
  0x5d   :  { %549 = vmatpush3.bf16.msra.mxu0 %v548_v41  ;;  %p670_p7 = por %p669_p6, %p668_p5 }
  0x5e   :  { %531 = vmatpush3.bf16.msra.mxu1 %v530_v23  ;;  %550 = vmatprep.subr.bf16.mxu0 %v699_v0 }
  0x5f   :  { %532 = vmatprep.subr.bf16.mxu1 %v699_v0  ;;  %p671_p8 = pnand %p670_p7, %p664_p4 }
  0x61   :  { %552 = vmatpush3.bf16.msra.mxu0 %v551_v44 }
  0x62   :  { %534 = vmatpush3.bf16.msra.mxu1 %v533_v26  ;;  %553 = vmatprep.subr.bf16.mxu0 %v699_v0 }
  0x63   :  { %535 = vmatprep.subr.bf16.mxu1 %v699_v0 }
  0x65   :  { %555 = vmatpush3.bf16.msra.mxu0 %v554_v47 }
  0x66   :  { %537 = vmatpush3.bf16.msra.mxu1 %v536_v29  ;;  %556 = vmatprep.subr.bf16.mxu0 %v699_v0 }
  0x67   :  { %538 = vmatprep.subr.bf16.mxu1 %v699_v0 }
  0x69   :  { %558 = vmatpush3.bf16.msra.mxu0 %v557_v50 }
  0x6a   :  { %540 = vmatpush3.bf16.msra.mxu1 %v539_v32  ;;  %559 = vmatprep.subr.bf16.mxu0 %v699_v0 }
  0x6d   :  { %561 = vmatpush3.bf16.msra.mxu0 %v560_v53 }
  0x6e   :  { %562 = vmatprep.subr.bf16.mxu0 %v699_v0 }
  0x71   :  { %564 = vmatpush3.bf16.msra.mxu0 %v563_v62 }
 0x127   :  { %v162_v55 = vpop.f32.mrb[0].mxu0 }
 0x128   :  { %v163_v56 = vadd.f32 %v387_v54, %v162_v55  ;;  %v440_v57 = vpop.f32.mrb[1].mxu0 }
 0x12a   :  { %v167_v58 = vmul.f32 0.2, %v163_v56  ;;  %vm166_vm2 = vcmp.gt.f32.partialorder %v163_v56, 0.0 }
 0x12c   :  { %v168_v59 = vsel %vm166_vm2, %v163_v56, %v167_v58 }
 0x12d   :  { %474 = vmatmul.mubr.f32.vlgmr.msra.gmra.mrb[0].mxu1 %v168_v59 }
 0x200   :  { %v258_v0 = vpop.f32.mrb[0].mxu1 }
 0x201   :  { %v259_v1 = vadd.f32 %v389_v63, %v258_v0  ;;  %v475_v2 = vpop.f32.mrb[1].mxu1 }
 0x203   :  { %vm262_vm3 = vcmp.gt.f32.partialorder %v259_v1, 0.0  ;;  %v263_v3 = vmul.f32 0.2, %v259_v1 }
 0x205   :  { %v264_v4 = vsel %vm262_vm3, %v259_v1, %v263_v3 }
 0x206   :  { %509 = vmatmul.mubr.f32.vlgmr.msra.gmra.mrb[2].mxu0 %v264_v4 }
 0x2d9   :  { %v354_v6 = vpop.f32.mrb[2].mxu0 }
 0x2da   :  { %v510_v7 = vpop.f32.mrb[3].mxu0  ;;  %v355_v8 = vadd.f32 %v390_v5, %v354_v6 }
 0x2dc   :  { %358 = vadd.xlane.f32.xlu0 %v355_v8 }
 0x369   :  { %v359_v13 = vpop.xlane.xlu0 %358 }
 0x36a   :  { %v366_v14 = vrot.slane %v359_v13, %v365_v12 }
 0x36c   :  { %369 = vst.msk [vmem:[#allocation10] sm:$0x1] %vm368_vm4, %v366_v14 }
 0x36d   :  { %674 = shalt.err (!%p671_p8)
}
 0x36e   :  { %s675_s9 = scalar_lea.hbm %s849_s7, 16 }
 0x36f   :  { %p676_p9 = scmp.ne.s32.totalorder %s849_s7, %s675_s9  ;;  %p679_p10 = scmp.lt.u32.totalorder %s675_s9, %s849_s7 }
 0x371   :  { %p681_p11 = pnand %p679_p10, %p676_p9 }
 0x373   :  { %684 = shalt.err (!%p681_p11)
}
 0x374   :  { %379 = dma.vmem_to_hbm [thread:$0]  %s377_s28, 16, %s849_s7, [#allocation4]  }
 0x375   :  { %691 = dma.done.wait [#allocation4], 16  }
 0x376   :  { %692 = vsyncadd [#allocation4], 4294967280 }
 0x377   :  { %383 = vsyncpa [#allocation3], 1 }
 0x378   :  { %384 = vsyncpa [#allocation6], 1 }
 0x379   :  { %385 = vsyncpa [#allocation9], 1 }
 0x37a   :  { %386 = vsyncpa [#allocation4], 1 }

</bundles_post_ra>
